<compile_context>
chip_gen: v7x
topology: tpu7x:2x2x1
jax: 0.10.0
libtpu: 0.0.40
codegen_flags: <defaults>
</compile_context>

<pallas_src>
import functools

import jax
import jax.numpy as jnp
from jax.experimental import pallas as pl
from jax.experimental.pallas import tpu as pltpu

HIDDEN = 64  # hidden size hard-coded in the torch module


def _round_up(x, m):
    return (x + m - 1) // m * m


def _cdiv(a, b):
    return (a + b - 1) // b


def _mlp_kernel(x_ref, w1_ref, b1_ref, w2_ref, b2_ref, o_ref):
    # x: (TB, dim_state) f32 tile; weights/biases are full arrays, VMEM resident.
    h = jnp.dot(x_ref[...], w1_ref[...], preferred_element_type=jnp.float32)
    h = jnp.maximum(h + b1_ref[...], 0.0)  # bias + ReLU on the VPU, f32
    o = jnp.dot(h, w2_ref[...], preferred_element_type=jnp.float32)
    o_ref[...] = (o + b2_ref[...]).astype(o_ref.dtype)


@functools.partial(jax.jit, static_argnames=("n_heads", "dim_act", "block_b"))
def pbac_actor_forward(x, w1, b1, w2, b2, n_heads, dim_act, block_b=1024):
    """Forward of DummyPBACActorWrapper.

    x: (B, dim_state) f32; w1: (dim_state, 64); b1: (64,);
    w2: (64, n_heads*dim_act*2); b2: (n_heads*dim_act*2,).
    Returns (B, n_heads, 2*dim_act) f32.
    """
    B, dim_state = x.shape
    hidden = w1.shape[1]
    out_dim = n_heads * dim_act * 2
    assert w2.shape == (hidden, out_dim), (w2.shape, hidden, out_dim)

    # Tiny metadata-only reshapes (no padding, no dynamic-update-slice per call).
    b1r = b1.reshape(1, hidden).astype(jnp.float32)
    b2r = b2.reshape(1, out_dim).astype(jnp.float32)

    # Batch tile: multiple of 8 sublanes (or the whole tiny batch), capped by
    # block_b; for B >= 16 force >= 2 grid steps so v7x's 2nd TensorCore is used.
    block_b = max(8, _round_up(block_b, 8))
    if B <= 8:
        tb = B                      # single block == full array dim (always legal)
    else:
        tb = min(block_b, _round_up(B, 8))
        if _cdiv(B, tb) < 2:
            tb = _round_up(_cdiv(B, 2), 8)
    grid = (_cdiv(B, tb),)

    cost = pl.CostEstimate(
        flops=2 * B * dim_state * hidden + 2 * B * hidden * out_dim,
        transcendentals=0,
        bytes_accessed=4 * (B * dim_state + B * out_dim
                            + dim_state * hidden + hidden
                            + hidden * out_dim + out_dim),
    )

    out = pl.pallas_call(
        _mlp_kernel,
        out_shape=jax.ShapeDtypeStruct((B, out_dim), jnp.float32),
        grid_spec=pltpu.PrefetchScalarGridSpec(
            num_scalar_prefetch=0,
            grid=grid,
            in_specs=[
                # x tile: pipelined (double-buffered) over the batch axis.
                pl.BlockSpec((tb, dim_state), lambda i: (i, 0)),
                # Weights / biases: constant block index -> fetched once, resident.
                pl.BlockSpec((dim_state, hidden), lambda i: (0, 0)),
                pl.BlockSpec((1, hidden), lambda i: (0, 0)),
                pl.BlockSpec((hidden, out_dim), lambda i: (0, 0)),
                pl.BlockSpec((1, out_dim), lambda i: (0, 0)),
            ],
            out_specs=pl.BlockSpec((tb, out_dim), lambda i: (i, 0)),
        ),
        compiler_params=pltpu.CompilerParams(
            dimension_semantics=("parallel",)),  # shards batch steps over v7x's 2 TCs
        cost_estimate=cost,
    )(x.astype(jnp.float32), w1.astype(jnp.float32), b1r,
      w2.astype(jnp.float32), b2r)

    # Free metadata reshape == torch .view(B, n_heads, 2*dim_act).
    return out.reshape(B, n_heads, 2 * dim_act)


def init_params(key, dim_state, dim_act, n_heads, hidden=HIDDEN):
    """Deterministic init mimicking torch.nn.Linear default U(-1/sqrt(fan_in), +)."""
    k1, k2, k3, k4 = jax.random.split(key, 4)
    out_dim = n_heads * dim_act * 2
    bound1 = 1.0 / jnp.sqrt(dim_state)
    bound2 = 1.0 / jnp.sqrt(hidden)
    w1 = jax.random.uniform(k1, (dim_state, hidden), jnp.float32, -bound1, bound1)
    b1 = jax.random.uniform(k2, (hidden,), jnp.float32, -bound1, bound1)
    w2 = jax.random.uniform(k3, (hidden, out_dim), jnp.float32, -bound2, bound2)
    b2 = jax.random.uniform(k4, (out_dim,), jnp.float32, -bound2, bound2)
    return w1, b1, w2, b2


def _ref_forward(x, w1, b1, w2, b2, n_heads, dim_act):
    """Plain-JAX f32 reference (mirrors the torch forward)."""
    h = jnp.maximum(x @ w1 + b1.reshape(1, -1), 0.0)
    o = h @ w2 + b2.reshape(1, -1)
    return o.reshape(x.shape[0], n_heads, 2 * dim_act)


if __name__ == "__main__":
    dim_state = 32
    dim_act = 8
    n_heads = 2

    key = jax.random.PRNGKey(0)
    kx1, kx2, kp = jax.random.split(key, 3)
    w1, b1, w2, b2 = init_params(kp, dim_state, dim_act, n_heads)

    # Tiny batch (B=2): single block whose dims equal the full array dims.
    B1 = 2
    x1 = jax.random.normal(kx1, (B1, dim_state), jnp.float32)
    out1 = jax.block_until_ready(
        pbac_actor_forward(x1, w1, b1, w2, b2, n_heads, dim_act))
    assert out1.shape == (B1, n_heads, 2 * dim_act), out1.shape
    ref1 = _ref_forward(x1, w1, b1, w2, b2, n_heads, dim_act)
    err1 = float(jnp.max(jnp.abs(out1 - ref1)))
    assert jnp.allclose(out1, ref1, atol=5e-2, rtol=5e-2), f"max|diff|={err1}"

    # Multi-step batch with a ragged tail (B=20 -> tb=16, grid=2 steps).
    B2 = 20
    x2 = jax.random.normal(kx2, (B2, dim_state), jnp.float32)
    out2 = jax.block_until_ready(
        pbac_actor_forward(x2, w1, b1, w2, b2, n_heads, dim_act))
    assert out2.shape == (B2, n_heads, 2 * dim_act), out2.shape
    ref2 = _ref_forward(x2, w1, b1, w2, b2, n_heads, dim_act)
    err2 = float(jnp.max(jnp.abs(out2 - ref2)))
    assert jnp.allclose(out2, ref2, atol=5e-2, rtol=5e-2), f"max|diff|={err2}"

    print("KERNEL_OK")
</pallas_src>

<mosaic_0001>
module attributes {stable_mosaic.version = 11 : i64} {
  func.func @_mlp_kernel(%arg0: i32, %arg1: memref<2x32xf32, #tpu.memory_space<vmem>>, %arg2: memref<32x64xf32, #tpu.memory_space<vmem>>, %arg3: memref<1x64xf32, #tpu.memory_space<vmem>>, %arg4: memref<64x32xf32, #tpu.memory_space<vmem>>, %arg5: memref<1x32xf32, #tpu.memory_space<vmem>>, %arg6: memref<2x32xf32, #tpu.memory_space<vmem>>) attributes {dimension_semantics = [#tpu.dimension_semantics<parallel>], iteration_bounds = array<i64: 1>, scalar_prefetch = 0 : i64, scratch_operands = 0 : i64, tpu.core_type = #tpu.core_type<tc>, window_params = [{transform_indices = @transform_0, window_bounds = array<i64: 2, 32>}, {pipeline_mode = #tpu.pipeline_mode<synchronous>, transform_indices = @transform_1, window_bounds = array<i64: 32, 64>}, {pipeline_mode = #tpu.pipeline_mode<synchronous>, transform_indices = @transform_2, window_bounds = array<i64: 1, 64>}, {pipeline_mode = #tpu.pipeline_mode<synchronous>, transform_indices = @transform_3, window_bounds = array<i64: 64, 32>}, {pipeline_mode = #tpu.pipeline_mode<synchronous>, transform_indices = @transform_4, window_bounds = array<i64: 1, 32>}, {transform_indices = @transform_5, window_bounds = array<i64: 2, 32>}]} {
    %c0 = arith.constant 0 : index
    %c0_0 = arith.constant 0 : index
    %0 = vector.load %arg1[%c0, %c0_0] : memref<2x32xf32, #tpu.memory_space<vmem>>, vector<2x32xf32>
    %c0_1 = arith.constant 0 : index
    %c0_2 = arith.constant 0 : index
    %1 = vector.load %arg2[%c0_1, %c0_2] : memref<32x64xf32, #tpu.memory_space<vmem>>, vector<32x64xf32>
    %cst = arith.constant dense<0.000000e+00> : vector<2x64xf32>
    %2 = tpu.matmul %0, %1, %cst {dimension_numbers = #tpu.dot_dimension_numbers<[1], [0], [0], [1], [0, 0, 1, 1], [], []>} : vector<2x32xf32>, vector<32x64xf32>, vector<2x64xf32> -> vector<2x64xf32>
    %c0_3 = arith.constant 0 : index
    %c0_4 = arith.constant 0 : index
    %3 = vector.load %arg3[%c0_3, %c0_4] : memref<1x64xf32, #tpu.memory_space<vmem>>, vector<1x64xf32>
    %4 = vector.broadcast %3 : vector<1x64xf32> to vector<2x64xf32>
    %5 = arith.addf %2, %4 : vector<2x64xf32>
    %cst_5 = arith.constant 0.000000e+00 : f32
    %6 = vector.broadcast %cst_5 : f32 to vector<2x64xf32>
    %7 = arith.maximumf %5, %6 : vector<2x64xf32>
    %c0_6 = arith.constant 0 : index
    %c0_7 = arith.constant 0 : index
    %8 = vector.load %arg4[%c0_6, %c0_7] : memref<64x32xf32, #tpu.memory_space<vmem>>, vector<64x32xf32>
    %cst_8 = arith.constant dense<0.000000e+00> : vector<2x32xf32>
    %9 = tpu.matmul %7, %8, %cst_8 {dimension_numbers = #tpu.dot_dimension_numbers<[1], [0], [0], [1], [0, 0, 1, 1], [], []>} : vector<2x64xf32>, vector<64x32xf32>, vector<2x32xf32> -> vector<2x32xf32>
    %c0_9 = arith.constant 0 : index
    %c0_10 = arith.constant 0 : index
    %10 = vector.load %arg5[%c0_9, %c0_10] : memref<1x32xf32, #tpu.memory_space<vmem>>, vector<1x32xf32>
    %11 = vector.broadcast %10 : vector<1x32xf32> to vector<2x32xf32>
    %12 = arith.addf %9, %11 : vector<2x32xf32>
    %c0_11 = arith.constant 0 : index
    %c0_12 = arith.constant 0 : index
    %13 = vector.load %arg6[%c0_11, %c0_12] : memref<2x32xf32, #tpu.memory_space<vmem>>, vector<2x32xf32>
    tpu.vector_store %arg6[%c0_11, %c0_12], %12 {strides = array<i32>} : memref<2x32xf32, #tpu.memory_space<vmem>>, vector<2x32xf32>,
    return
  }
  func.func @transform_0(%arg0: i32) -> (i32, i32) {
    %c0_i32 = arith.constant 0 : i32
    %c0_i32_0 = arith.constant 0 : i32
    return %arg0, %c0_i32 : i32, i32
  }
  func.func @transform_1(%arg0: i32) -> (i32, i32) {
    %c0_i32 = arith.constant 0 : i32
    %c0_i32_0 = arith.constant 0 : i32
    %c0_i32_1 = arith.constant 0 : i32
    return %c0_i32, %c0_i32_0 : i32, i32
  }
  func.func @transform_2(%arg0: i32) -> (i32, i32) {
    %c0_i32 = arith.constant 0 : i32
    %c0_i32_0 = arith.constant 0 : i32
    %c0_i32_1 = arith.constant 0 : i32
    return %c0_i32, %c0_i32_0 : i32, i32
  }
  func.func @transform_3(%arg0: i32) -> (i32, i32) {
    %c0_i32 = arith.constant 0 : i32
    %c0_i32_0 = arith.constant 0 : i32
    %c0_i32_1 = arith.constant 0 : i32
    return %c0_i32, %c0_i32_0 : i32, i32
  }
  func.func @transform_4(%arg0: i32) -> (i32, i32) {
    %c0_i32 = arith.constant 0 : i32
    %c0_i32_0 = arith.constant 0 : i32
    %c0_i32_1 = arith.constant 0 : i32
    return %c0_i32, %c0_i32_0 : i32, i32
  }
  func.func @transform_5(%arg0: i32) -> (i32, i32) {
    %c0_i32 = arith.constant 0 : i32
    %c0_i32_0 = arith.constant 0 : i32
    return %arg0, %c0_i32 : i32, i32
  }
}

</mosaic_0001>

<bundles_post_ra>
// kernel: pbac_actor_forward.1
= control target key start
LH: loop header
LB: loop body
LE: loop exit
PB: predicated region body
PF: predicated region fallthrough
CT: control target
= control target key end

     0   :  { %v271_v0 = vmov 0.0|0.0   ;;  %vm272_vm0 = vmmov 0   ;;  %v273_v4 = vmov 0.0   ;;  %vm32_vm1 = vcmask 261120   ;;  %s352_s1 = inlined_call_operand.vmem [shape: f32[32,64], index: 1, kind: input, shape index: {}]   ;;  %s353_s3 = inlined_call_operand.vmem [shape: f32[64,32], index: 3, kind: input, shape index: {}]   ;;  %s354_s0 = inlined_call_operand.vmem [shape: f32[2,32], index: 0, kind: input, shape index: {}]   ;;  %s355_s2 = inlined_call_operand.vmem [shape: f32[1,64], index: 2, kind: input, shape index: {}]   ;;  %s356_s4 = inlined_call_operand.vmem [shape: f32[1,32], index: 4, kind: input, shape index: {}]   ;;  %s357_s5 = inlined_call_operand.vmem [shape: f32[2,32], index: 5, kind: output, shape index: {}]  }
   0x1   :  { %250 = vmatprep.subr.bf16.mxu0 %v271_v0  ;;  %v21_v1 = vld [vmem:[%s352_s1] sm:$0xff]  ;;  %v22_v2 = vld [vmem:[%s352_s1 + $0x8] sm:$0xff]  ;;  %v23_v3 = vld [vmem:[%s352_s1 + $0x10] sm:$0xff]  ;;  %228 = vmatprep.mubr.msk.f32.mxu0 %vm272_vm0, %v273_v4  ;;  %vm122_vm2 = vcmask 523264   ;;  %vm196_vm3 = vcmask 254976  }
   0x2   :  { %v251_v5 = vpack.c.bf16 %v22_v2, %v21_v1  ;;  %v24_v6 = vld [vmem:[%s352_s1 + $0x18] sm:$0xff]  ;;  %256 = vmatprep.subr.bf16.mxu1 %v271_v0  ;;  %v107_v7 = vld [vmem:[%s353_s3] sm:$0xff]  ;;  %247 = vmatprep.mubr.msk.f32.mxu1 %vm272_vm0, %v273_v4  ;;  %v108_v8 = vld [vmem:[%s353_s3 + $0x8] sm:$0xff] }
   0x3   :  { %v109_v9 = vld [vmem:[%s353_s3 + $0x10] sm:$0xff]  ;;  %v110_v10 = vld [vmem:[%s353_s3 + $0x18] sm:$0xff]  ;;  %v254_v11 = vpack.c.bf16 %v24_v6, %v23_v3  ;;  %v257_v12 = vpack.c.bf16 %v108_v8, %v107_v7  ;;  %v111_v14 = vld [vmem:[%s353_s3 + $0x20] sm:$0xff] }
   0x4   :  { %252 = vmatpush3.bf16.msra.mxu0 %v251_v5  ;;  %v260_v13 = vpack.c.bf16 %v110_v10, %v109_v9  ;;  %v112_v15 = vld [vmem:[%s353_s3 + $0x28] sm:$0xff]  ;;  %v20_v16 = vld [vmem:[%s354_s0] sm:$0x3]  ;;  %v113_v18 = vld [vmem:[%s353_s3 + $0x30] sm:$0xff] }
   0x5   :  { %253 = vmatprep.subr.bf16.mxu0 %v271_v0  ;;  %258 = vmatpush3.bf16.msra.mxu1 %v257_v12  ;;  %v263_v17 = vpack.c.bf16 %v112_v15, %v111_v14  ;;  %v114_v19 = vld [vmem:[%s353_s3 + $0x38] sm:$0xff]  ;;  %v202_v21 = vld [vmem:[%s355_s2] ss:$0 sm:$0xff] }
   0x6   :  { %259 = vmatprep.subr.bf16.mxu1 %v271_v0  ;;  %v266_v20 = vpack.c.bf16 %v114_v19, %v113_v18  ;;  %v204_v26 = vld [vmem:[%s356_s4] ss:$0 sm:$0xff] }
   0x8   :  { %255 = vmatpush3.bf16.msra.mxu0 %v254_v11 }
   0x9   :  { %261 = vmatpush3.bf16.msra.mxu1 %v260_v13 }
   0xa   :  { %262 = vmatprep.subr.bf16.mxu1 %v271_v0 }
   0xb   :  { %229 = vmatmul.mubr.msk.f32.vlgmr.msra.gmra.mrb[0].mxu0 %vm32_vm1, %v20_v16 }
   0xd   :  { %264 = vmatpush3.bf16.msra.mxu1 %v263_v17 }
   0xe   :  { %265 = vmatprep.subr.bf16.mxu1 %v271_v0 }
  0x11   :  { %267 = vmatpush3.bf16.msra.mxu1 %v266_v20 }
  0xde   :  { %v102_v22 = vpop.f32.mrb[0].mxu0 }
  0xdf   :  { %v103_v23 = vadd.f32 %v202_v21, %v102_v22  ;;  %v230_v24 = vpop.f32.mrb[1].mxu0 }
  0xe1   :  { %v106_v25 = vmax.f32 %v103_v23, 0.0 }
  0xe3   :  { %248 = vmatmul.mubr.msk.f32.vlgmr.msra.gmra.mrb[0].mxu1 %vm122_vm2, %v106_v25 }
 0x1b6   :  { %v192_v27 = vpop.f32.mrb[0].mxu1 }
 0x1b7   :  { %v193_v28 = vadd.f32 %v204_v26, %v192_v27  ;;  %v249_v29 = vpop.f32.mrb[1].mxu1 }
 0x1b9   :  { %197 = vst.msk [vmem:[%s357_s5] sm:$0x3] %vm196_vm3, %v193_v28 }

</bundles_post_ra>
